<compile_context>
chip_gen: v7x
topology: tpu7x:2x2x1
jax: 0.10.0
libtpu: 0.0.40
codegen_flags: <defaults>
</compile_context>

<pallas_src>
import functools
import math

import jax
import jax.numpy as jnp
from jax import lax
from jax.experimental import pallas as pl
from jax.experimental.pallas import tpu as pltpu

_NEG_INF = -1e30  # finite "-inf" so exp() underflows to 0 without inf-inf NaNs


def _cdiv(a, b):
    return -(-a // b)


def _round_up(a, m):
    return _cdiv(a, m) * m


def _ce_kernel(x_ref, w_ref, t_ref, out_ref, acc_ref, m_sc, l_sc, tgt_sc, *,
               tb, tn, n_rows, n_classes, nj, nk, class_padded, batch_padded):
    i = pl.program_id(0)   # batch tile        (parallel)
    j = pl.program_id(1)   # class tile        (softmax reduction)
    k = pl.program_id(2)   # contraction tile  (matmul reduction)

    @pl.when((j == 0) & (k == 0))
    def _init():
        m_sc[...] = jnp.full_like(m_sc, _NEG_INF)
        l_sc[...] = jnp.zeros_like(l_sc)
        tgt_sc[...] = jnp.zeros_like(tgt_sc)

    # Hot path: MXU matmul in the operands' native dtype, f32 accumulation.
    prod = jnp.dot(x_ref[...], w_ref[...], preferred_element_type=jnp.float32)

    def _softmax_update(logits):
        col_ids = j * tn + lax.broadcasted_iota(jnp.int32, (tb, tn), 1)
        tgt = t_ref[...]                                      # (tb, 1) int32

        def _step(masked):
            m_new = jnp.maximum(m_sc[...],
                                jnp.max(masked, axis=-1, keepdims=True))
            alpha = jnp.exp(m_sc[...] - m_new)
            p = jnp.exp(masked - m_new)
            l_sc[...] = alpha * l_sc[...] + jnp.sum(p, axis=-1, keepdims=True)
            # Targets are always < n_classes, so raw logits are safe here.
            tgt_sc[...] += jnp.sum(jnp.where(col_ids == tgt, logits, 0.0),
                                   axis=-1, keepdims=True)
            m_sc[...] = m_new

        if not class_padded:
            _step(logits)                                     # no pad: no mask
        elif nj == 1:
            _step(jnp.where(col_ids < n_classes, logits, _NEG_INF))
        else:
            # Class padding is confined to the last class tile; only mask there.
            @pl.when(j < nj - 1)
            def _unmasked():
                _step(logits)

            @pl.when(j == nj - 1)
            def _masked():
                _step(jnp.where(col_ids < n_classes, logits, _NEG_INF))

        @pl.when(j == nj - 1)
        def _finalize():
            lse = m_sc[...] + jnp.log(l_sc[...])              # (tb, 1)
            per_example = lse - tgt_sc[...]                   # (tb, 1)
            if batch_padded:
                row_ids = i * tb + lax.broadcasted_iota(jnp.int32, (tb, 1), 0)
                per_example = jnp.where(row_ids < n_rows, per_example, 0.0)
            partial = jnp.sum(per_example)
            # Lane-dense (8,128) unmasked store of this batch tile's partial.
            out_ref[...] = jnp.broadcast_to(partial, (8, 128)).astype(jnp.float32)

    if nk == 1:
        _softmax_update(prod)                                 # no K accumulator
    else:
        @pl.when(k == 0)
        def _acc_init():
            acc_ref[...] = prod

        @pl.when(k != 0)
        def _acc_add():
            acc_ref[...] += prod

        @pl.when(k == nk - 1)
        def _epilogue():
            _softmax_update(acc_ref[...])


def ce_loss(x, fc, target, *, tb_max=256, tn_max=512, tk_max=1024,
            compute_dtype=None):
    """input (B, dim), fc (dim, cN), target (B,) int -> scalar f32 mean CE.

    compute_dtype: optionally cast x/fc (e.g. jnp.bfloat16) for native-MXU
    throughput; accumulation stays f32. Default None = keep input dtype.
    """
    B, dim = x.shape
    dim2, cN = fc.shape
    assert dim == dim2
    assert tb_max % 8 == 0 and tn_max % 128 == 0 and tk_max % 128 == 0

    if compute_dtype is not None:
        x = x.astype(compute_dtype)
        fc = fc.astype(compute_dtype)
    itemsize = jnp.dtype(x.dtype).itemsize

    D_al = _round_up(dim, 128)
    C_al = _round_up(cN, 128)

    # ---- generation-aware VMEM budget -----------------------------------
    try:
        vmem_cap = int(pltpu.get_tpu_info().vmem_capacity_bytes)
    except Exception:
        vmem_cap = 64 << 20          # conservative fallback: v7x per-TC VMEM
    budget = int(0.6 * vmem_cap)

    # ---- balanced tiles (minimize padding waste) -------------------------
    def balanced(total, align, tmax):
        total_al = _round_up(total, align)
        n = _cdiv(total_al, tmax)
        t = _round_up(_cdiv(total_al, n), align)
        n = _cdiv(total_al, t)
        return t, n

    TK, n_kt = balanced(dim, 128, tk_max)
    TB, n_bt = balanced(B, 8, tb_max)

    def tile_bytes(tb, tn, tk, nk):
        b = 2 * (tb * tk + tk * tn) * itemsize     # double-buffered x / fc tiles
        b += tb * tn * 4 * (2 if nk > 1 else 1)    # logits (+ f32 K accumulator)
        b += 2 * tb * 4 + 3 * tb * 4               # targets + softmax state
        b += 2 * 8 * 128 * 4                       # partial-sum output block
        return b

    # Keep the whole fc matrix resident (single block, constant index_map ->
    # DMA'd once for the entire grid) whenever it fits the VMEM budget: this
    # eliminates per-batch-tile weight re-streaming for skinny-dim problems.
    if n_kt == 1 and tile_bytes(TB, C_al, TK, 1) <= budget:
        TN, n_ct = C_al, 1
    else:
        TN, n_ct = balanced(cN, 128, tn_max)

    # Shrink tiles until they fit the VMEM budget (TN first, then TK, then TB).
    for _ in range(64):
        if tile_bytes(TB, TN, TK, n_kt) <= budget:
            break
        if TN > 128:
            n_ct += 1
            TN = _round_up(_cdiv(C_al, n_ct), 128)
            n_ct = _cdiv(C_al, TN)
        elif TK > 128:
            n_kt += 1
            TK = _round_up(_cdiv(D_al, n_kt), 128)
            n_kt = _cdiv(D_al, TK)
        elif TB > 8:
            n_bt += 1
            TB = _round_up(_cdiv(B, n_bt), 8)
            n_bt = _cdiv(B, TB)
        else:
            break

    # v7x megacore: guarantee >=2 batch tiles on the "parallel" axis when the
    # weights are grid-resident (splitting then costs no extra fc traffic).
    if n_bt == 1 and B > 8 and n_ct * n_kt == 1:
        TB = _round_up(_cdiv(B, 2), 8)
        n_bt = _cdiv(B, TB)

    B_pad, C_pad, D_pad = n_bt * TB, n_ct * TN, n_kt * TK
    # Class padding must be confined to the last class tile (kernel fast path).
    assert (n_ct - 1) * TN <= cN

    class_padded = C_pad != cN
    batch_padded = B_pad != B

    # Pad only when shapes are actually unaligned (avoids a full HBM
    # read+write of fc on every call for aligned shapes).
    x_p = x if (B_pad == B and D_pad == dim) else jnp.pad(
        x, ((0, B_pad - B), (0, D_pad - dim)))
    w_p = fc if (D_pad == dim and C_pad == cN) else jnp.pad(
        fc, ((0, D_pad - dim), (0, C_pad - cN)))
    t_p = target.astype(jnp.int32)
    if batch_padded:
        t_p = jnp.pad(t_p, (0, B_pad - B))
    t_p = t_p.reshape(B_pad, 1)

    needed = tile_bytes(TB, TN, TK, n_kt)
    vmem_limit = int(min(max(int(needed * 1.5), 16 << 20), int(0.75 * vmem_cap)))

    kernel = functools.partial(
        _ce_kernel, tb=TB, tn=TN, n_rows=B, n_classes=cN,
        nj=n_ct, nk=n_kt, class_padded=class_padded, batch_padded=batch_padded)

    acc_shape = (TB, TN) if n_kt > 1 else (8, 128)   # dummy when no K tiling

    out = pl.pallas_call(
        kernel,
        out_shape=jax.ShapeDtypeStruct((n_bt * 8, 128), jnp.float32),
        grid=(n_bt, n_ct, n_kt),
        in_specs=[
            pl.BlockSpec((TB, TK), lambda i, j, k: (i, k)),
            # TODO(synk): if profiling shows exposed weight DMA for skinny
            # dims, add pipeline_mode=pl.Buffered(3) on this weight spec.
            pl.BlockSpec((TK, TN), lambda i, j, k: (k, j)),
            pl.BlockSpec((TB, 1), lambda i, j, k: (i, 0)),
        ],
        out_specs=pl.BlockSpec((8, 128), lambda i, j, k: (i, 0)),
        scratch_shapes=[
            pltpu.VMEM(acc_shape, jnp.float32),   # f32 logits accumulator (K axis)
            pltpu.VMEM((TB, 1), jnp.float32),     # running max
            pltpu.VMEM((TB, 1), jnp.float32),     # running exp-sum
            pltpu.VMEM((TB, 1), jnp.float32),     # running target logit
        ],
        compiler_params=pltpu.CompilerParams(
            dimension_semantics=("parallel", "arbitrary", "arbitrary"),
            vmem_limit_bytes=vmem_limit,
        ),
    )(x_p, w_p, t_p)

    partials = out[::8, 0]                        # one partial per batch tile
    return jnp.sum(partials) / B


def init_fc(key, dim, cN):
    # Mirrors torch.nn.init.kaiming_uniform_(fc, a=sqrt(5)) on a (dim, cN)
    # tensor: fan_in = cN, bound = 1/sqrt(cN).
    bound = 1.0 / math.sqrt(cN)
    return jax.random.uniform(
        key, (dim, cN), dtype=jnp.float32, minval=-bound, maxval=bound
    )


def _reference(x, fc, target):
    logits = x @ fc
    logz = jax.nn.logsumexp(logits, axis=-1)
    tgt_logit = jnp.take_along_axis(logits, target[:, None], axis=-1)[:, 0]
    return jnp.mean(logz - tgt_logit)


if __name__ == "__main__":
    key = jax.random.PRNGKey(0)

    # Small test (single-tile path, resident fc, padded classes).
    B, dim, cN = 8, 32, 16
    k_x, k_w, k_t, key = jax.random.split(key, 4)
    x = jax.random.normal(k_x, (B, dim), dtype=jnp.float32)
    fc = init_fc(k_w, dim, cN)
    target = jax.random.randint(k_t, (B,), 0, cN, dtype=jnp.int32)

    loss = ce_loss(x, fc, target)
    jax.block_until_ready(loss)
    ref = _reference(x, fc, target)
    assert jnp.allclose(loss, ref, atol=1e-5, rtol=1e-5), (loss, ref)

    # Multi-batch-tile test: resident fc (loaded once), batch padding,
    # megacore-friendly parallel batch axis.
    B2, dim2, cN2 = 270, 96, 700
    k_x, k_w, k_t, key = jax.random.split(key, 4)
    x2 = jax.random.normal(k_x, (B2, dim2), dtype=jnp.float32)
    fc2 = init_fc(k_w, dim2, cN2)
    target2 = jax.random.randint(k_t, (B2,), 0, cN2, dtype=jnp.int32)

    loss2 = ce_loss(x2, fc2, target2)
    jax.block_until_ready(loss2)
    ref2 = _reference(x2, fc2, target2)
    assert jnp.allclose(loss2, ref2, atol=1e-4, rtol=1e-4), (loss2, ref2)

    # Forced multi-tile test: K-axis accumulation + class-tiled online softmax
    # with a padded last class tile (dynamic last-tile masking path).
    B3, dim3, cN3 = 48, 384, 260
    k_x, k_w, k_t, key = jax.random.split(key, 4)
    x3 = jax.random.normal(k_x, (B3, dim3), dtype=jnp.float32)
    fc3 = init_fc(k_w, dim3, cN3)
    target3 = jax.random.randint(k_t, (B3,), 0, cN3, dtype=jnp.int32)

    loss3 = ce_loss(x3, fc3, target3, tb_max=64, tn_max=256, tk_max=128)
    jax.block_until_ready(loss3)
    ref3 = _reference(x3, fc3, target3)
    assert jnp.allclose(loss3, ref3, atol=1e-4, rtol=1e-4), (loss3, ref3)

    print("KERNEL_OK")
</pallas_src>

<mosaic_0001>
module attributes {stable_mosaic.version = 11 : i64} {
  func.func @_ce_kernel(%arg0: i32, %arg1: i32, %arg2: i32, %arg3: memref<8x128xf32, #tpu.memory_space<vmem>>, %arg4: memref<128x128xf32, #tpu.memory_space<vmem>>, %arg5: memref<8x1xi32, #tpu.memory_space<vmem>>, %arg6: memref<8x128xf32, #tpu.memory_space<vmem>>, %arg7: memref<8x128xf32, #tpu.memory_space<vmem>>, %arg8: memref<8x1xf32, #tpu.memory_space<vmem>>, %arg9: memref<8x1xf32, #tpu.memory_space<vmem>>, %arg10: memref<8x1xf32, #tpu.memory_space<vmem>>) attributes {dimension_semantics = [#tpu.dimension_semantics<parallel>, #tpu.dimension_semantics<arbitrary>, #tpu.dimension_semantics<arbitrary>], iteration_bounds = array<i64: 1, 1, 1>, scalar_prefetch = 0 : i64, scratch_operands = 4 : i64, tpu.core_type = #tpu.core_type<tc>, window_params = [{transform_indices = @transform_0, window_bounds = array<i64: 8, 128>}, {transform_indices = @transform_1, window_bounds = array<i64: 128, 128>}, {transform_indices = @transform_2, window_bounds = array<i64: 8, 1>}, {transform_indices = @transform_3, window_bounds = array<i64: 8, 128>}]} {
    %c0_i32 = arith.constant 0 : i32
    %0 = arith.cmpi eq, %arg1, %c0_i32 : i32
    %c0_i32_0 = arith.constant 0 : i32
    %1 = arith.cmpi eq, %arg2, %c0_i32_0 : i32
    %2 = arith.andi %0, %1 : i1
    %3 = arith.extui %2 : i1 to i32
    %c0_i32_1 = arith.constant 0 : i32
    %4 = arith.cmpi ne, %3, %c0_i32_1 : i32
    scf.if %4 {
      %cst_28 = arith.constant -1.000000e+30 : f32
      %46 = vector.broadcast %cst_28 : f32 to vector<8x1xf32>
      %c0_29 = arith.constant 0 : index
      %c0_30 = arith.constant 0 : index
      %47 = vector.load %arg8[%c0_29, %c0_30] : memref<8x1xf32, #tpu.memory_space<vmem>>, vector<8x1xf32>
      tpu.vector_store %arg8[%c0_29, %c0_30], %46 {strides = array<i32>} : memref<8x1xf32, #tpu.memory_space<vmem>>, vector<8x1xf32>,
      %cst_31 = arith.constant 0.000000e+00 : f32
      %48 = vector.broadcast %cst_31 : f32 to vector<8x1xf32>
      %c0_32 = arith.constant 0 : index
      %c0_33 = arith.constant 0 : index
      %49 = vector.load %arg9[%c0_32, %c0_33] : memref<8x1xf32, #tpu.memory_space<vmem>>, vector<8x1xf32>
      tpu.vector_store %arg9[%c0_32, %c0_33], %48 {strides = array<i32>} : memref<8x1xf32, #tpu.memory_space<vmem>>, vector<8x1xf32>,
      %cst_34 = arith.constant 0.000000e+00 : f32
      %50 = vector.broadcast %cst_34 : f32 to vector<8x1xf32>
      %c0_35 = arith.constant 0 : index
      %c0_36 = arith.constant 0 : index
      %51 = vector.load %arg10[%c0_35, %c0_36] : memref<8x1xf32, #tpu.memory_space<vmem>>, vector<8x1xf32>
      tpu.vector_store %arg10[%c0_35, %c0_36], %50 {strides = array<i32>} : memref<8x1xf32, #tpu.memory_space<vmem>>, vector<8x1xf32>,
    } else {
    }
    %c0 = arith.constant 0 : index
    %c0_2 = arith.constant 0 : index
    %5 = vector.load %arg3[%c0, %c0_2] : memref<8x128xf32, #tpu.memory_space<vmem>>, vector<8x128xf32>
    %c0_3 = arith.constant 0 : index
    %c0_4 = arith.constant 0 : index
    %6 = vector.load %arg4[%c0_3, %c0_4] : memref<128x128xf32, #tpu.memory_space<vmem>>, vector<128x128xf32>
    %cst = arith.constant dense<0.000000e+00> : vector<8x128xf32>
    %7 = tpu.matmul %5, %6, %cst {dimension_numbers = #tpu.dot_dimension_numbers<[1], [0], [0], [1], [0, 0, 1, 1], [], []>} : vector<8x128xf32>, vector<128x128xf32>, vector<8x128xf32> -> vector<8x128xf32>
    %c128_i32 = arith.constant 128 : i32
    %8 = arith.muli %arg1, %c128_i32 : i32
    %9 = tpu.iota {dimensions = array<i32: 1>} : vector<8x128xi32>
    %10 = vector.broadcast %8 : i32 to vector<8x128xi32>
    %11 = arith.addi %10, %9 : vector<8x128xi32>
    %c0_5 = arith.constant 0 : index
    %c0_6 = arith.constant 0 : index
    %12 = vector.load %arg5[%c0_5, %c0_6] : memref<8x1xi32, #tpu.memory_space<vmem>>, vector<8x1xi32>
    %c16_i32 = arith.constant 16 : i32
    %13 = vector.broadcast %c16_i32 : i32 to vector<8x128xi32>
    %14 = arith.cmpi slt, %11, %13 : vector<8x128xi32>
    %cst_7 = arith.constant -1.000000e+30 : f32
    %15 = vector.broadcast %cst_7 : f32 to vector<8x128xf32>
    %16 = arith.select %14, %7, %15 : vector<8x128xi1>, vector<8x128xf32>
    %c0_8 = arith.constant 0 : index
    %c0_9 = arith.constant 0 : index
    %17 = vector.load %arg8[%c0_8, %c0_9] : memref<8x1xf32, #tpu.memory_space<vmem>>, vector<8x1xf32>
    %cst_10 = arith.constant dense<0xFF800000> : vector<8xf32>
    %18 = vector.multi_reduction <maximumf>, %16, %cst_10 [1] : vector<8x128xf32> to vector<8xf32>
    %19 = vector.shape_cast %18 : vector<8xf32> to vector<8x1xf32>
    %20 = arith.maximumf %17, %19 : vector<8x1xf32>
    %c0_11 = arith.constant 0 : index
    %c0_12 = arith.constant 0 : index
    %21 = vector.load %arg8[%c0_11, %c0_12] : memref<8x1xf32, #tpu.memory_space<vmem>>, vector<8x1xf32>
    %22 = arith.subf %21, %20 : vector<8x1xf32>
    %23 = math.exp %22 : vector<8x1xf32>
    %24 = vector.broadcast %20 : vector<8x1xf32> to vector<8x128xf32>
    %25 = arith.subf %16, %24 : vector<8x128xf32>
    %26 = math.exp %25 : vector<8x128xf32>
    %c0_13 = arith.constant 0 : index
    %c0_14 = arith.constant 0 : index
    %27 = vector.load %arg9[%c0_13, %c0_14] : memref<8x1xf32, #tpu.memory_space<vmem>>, vector<8x1xf32>
    %28 = arith.mulf %23, %27 : vector<8x1xf32>
    %cst_15 = arith.constant dense<0.000000e+00> : vector<8xf32>
    %29 = vector.multi_reduction <add>, %26, %cst_15 [1] : vector<8x128xf32> to vector<8xf32>
    %30 = vector.shape_cast %29 : vector<8xf32> to vector<8x1xf32>
    %31 = arith.addf %28, %30 : vector<8x1xf32>
    %c0_16 = arith.constant 0 : index
    %c0_17 = arith.constant 0 : index
    %32 = vector.load %arg9[%c0_16, %c0_17] : memref<8x1xf32, #tpu.memory_space<vmem>>, vector<8x1xf32>
    tpu.vector_store %arg9[%c0_16, %c0_17], %31 {strides = array<i32>} : memref<8x1xf32, #tpu.memory_space<vmem>>, vector<8x1xf32>,
    %c0_18 = arith.constant 0 : index
    %c0_19 = arith.constant 0 : index
    %33 = vector.load %arg10[%c0_18, %c0_19] : memref<8x1xf32, #tpu.memory_space<vmem>>, vector<8x1xf32>
    %34 = vector.broadcast %12 : vector<8x1xi32> to vector<8x128xi32>
    %35 = arith.cmpi eq, %11, %34 : vector<8x128xi32>
    %cst_20 = arith.constant 0.000000e+00 : f32
    %36 = vector.broadcast %cst_20 : f32 to vector<8x128xf32>
    %37 = arith.select %35, %7, %36 : vector<8x128xi1>, vector<8x128xf32>
    %cst_21 = arith.constant dense<0.000000e+00> : vector<8xf32>
    %38 = vector.multi_reduction <add>, %37, %cst_21 [1] : vector<8x128xf32> to vector<8xf32>
    %39 = vector.shape_cast %38 : vector<8xf32> to vector<8x1xf32>
    %40 = arith.addf %33, %39 : vector<8x1xf32>
    %c0_22 = arith.constant 0 : index
    %c0_23 = arith.constant 0 : index
    %41 = vector.load %arg10[%c0_22, %c0_23] : memref<8x1xf32, #tpu.memory_space<vmem>>, vector<8x1xf32>
    tpu.vector_store %arg10[%c0_22, %c0_23], %40 {strides = array<i32>} : memref<8x1xf32, #tpu.memory_space<vmem>>, vector<8x1xf32>,
    %c0_24 = arith.constant 0 : index
    %c0_25 = arith.constant 0 : index
    %42 = vector.load %arg8[%c0_24, %c0_25] : memref<8x1xf32, #tpu.memory_space<vmem>>, vector<8x1xf32>
    tpu.vector_store %arg8[%c0_24, %c0_25], %20 {strides = array<i32>} : memref<8x1xf32, #tpu.memory_space<vmem>>, vector<8x1xf32>,
    %c0_i32_26 = arith.constant 0 : i32
    %43 = arith.cmpi eq, %arg1, %c0_i32_26 : i32
    %44 = arith.extui %43 : i1 to i32
    %c0_i32_27 = arith.constant 0 : i32
    %45 = arith.cmpi ne, %44, %c0_i32_27 : i32
    scf.if %45 {
      %c0_28 = arith.constant 0 : index
      %c0_29 = arith.constant 0 : index
      %46 = vector.load %arg8[%c0_28, %c0_29] : memref<8x1xf32, #tpu.memory_space<vmem>>, vector<8x1xf32>
      %c0_30 = arith.constant 0 : index
      %c0_31 = arith.constant 0 : index
      %47 = vector.load %arg9[%c0_30, %c0_31] : memref<8x1xf32, #tpu.memory_space<vmem>>, vector<8x1xf32>
      %48 = math.log %47 : vector<8x1xf32>
      %49 = arith.addf %46, %48 : vector<8x1xf32>
      %c0_32 = arith.constant 0 : index
      %c0_33 = arith.constant 0 : index
      %50 = vector.load %arg10[%c0_32, %c0_33] : memref<8x1xf32, #tpu.memory_space<vmem>>, vector<8x1xf32>
      %51 = arith.subf %49, %50 : vector<8x1xf32>
      %52 = vector.shape_cast %51 : vector<8x1xf32> to vector<1x8x1xf32>
      %cst_34 = arith.constant dense<0.000000e+00> : vector<1xf32>
      %53 = vector.multi_reduction <add>, %52, %cst_34 [1, 2] : vector<1x8x1xf32> to vector<1xf32>
      %54 = vector.shape_cast %53 : vector<1xf32> to vector<1x1x1xf32>
      %55 = vector.extract %54[0, 0, 0] : f32 from vector<1x1x1xf32>
      %56 = vector.broadcast %55 : f32 to vector<8x128xf32>
      %c0_35 = arith.constant 0 : index
      %c0_36 = arith.constant 0 : index
      %57 = vector.load %arg6[%c0_35, %c0_36] : memref<8x128xf32, #tpu.memory_space<vmem>>, vector<8x128xf32>
      tpu.vector_store %arg6[%c0_35, %c0_36], %56 {strides = array<i32>} : memref<8x128xf32, #tpu.memory_space<vmem>>, vector<8x128xf32>,
    } else {
    }
    return
  }
  func.func @transform_0(%arg0: i32, %arg1: i32, %arg2: i32) -> (i32, i32) {
    %c0_i32 = arith.constant 0 : i32
    return %arg0, %arg2 : i32, i32
  }
  func.func @transform_1(%arg0: i32, %arg1: i32, %arg2: i32) -> (i32, i32) {
    %c0_i32 = arith.constant 0 : i32
    return %arg2, %arg1 : i32, i32
  }
  func.func @transform_2(%arg0: i32, %arg1: i32, %arg2: i32) -> (i32, i32) {
    %c0_i32 = arith.constant 0 : i32
    %c0_i32_0 = arith.constant 0 : i32
    return %arg0, %c0_i32 : i32, i32
  }
  func.func @transform_3(%arg0: i32, %arg1: i32, %arg2: i32) -> (i32, i32) {
    %c0_i32 = arith.constant 0 : i32
    %c0_i32_0 = arith.constant 0 : i32
    return %arg0, %c0_i32 : i32, i32
  }
}

</mosaic_0001>

<bundles_post_ra>
// kernel: tpu_custom_call.1
= control target key start
LH: loop header
LB: loop body
LE: loop exit
PB: predicated region body
PF: predicated region fallthrough
CT: control target
= control target key end

     0   :  { %8 = vsyncpa [#allocation7], 0  ;;  %s413_s0 = inlined_call_operand.vmem [shape: f32[8,128], index: 0, kind: input, shape index: {}]   ;;  %s414_s1 = inlined_call_operand.hbm [shape: f32[128,128], index: 1, kind: input, shape index: {}]   ;;  %s415_s2 = inlined_call_operand.vmem [shape: s32[8,1], index: 2, kind: input, shape index: {}]   ;;  %s416_s3 = inlined_call_operand.hbm [shape: f32[8,128], index: 3, kind: output, shape index: {}]  }
   0x1   :  { %9 = vsyncpa [#allocation8], 0  ;;  %s347_s12 = smov [#allocation6]   ;;  %s299_s16 = scalar_lea.hbm %s414_s1, 2048 }
   0x2   :  { %s17_s13 = sshll.u32 %s347_s12, 4  ;;  %p300_p0 = scmp.ne.s32.totalorder %s414_s1, %s299_s16  ;;  %s18_s13 = int_to_ptr.vmem [resolvable:$true] %s17_s13 }
   0x3   :  { %p303_p1 = scmp.lt.u32.totalorder %s299_s16, %s414_s1 }
   0x5   :  { %p305_p2 = pnand %p303_p1, %p300_p0 }
   0x7   :  { %308 = shalt.err (!%p305_p2)
}
   0x8   :  { %s309_s21 = scalar_lea.vmem %s18_s13, 2048  ;;  %p314_p4 = scmp.lt.s32.totalorder %s18_s13, %s18_s13 }
   0x9   :  { %p310_p3 = scmp.ne.s32.totalorder %s18_s13, %s309_s21  ;;  %p315_p5 = scmp.lt.s32.totalorder %s309_s21, %s309_s21 }
   0xb   :  { %p316_p6 = por %p315_p5, %p314_p4 }
   0xd   :  { %p317_p7 = pnand %p316_p6, %p310_p3 }
   0xf   :  { %320 = shalt.err (!%p317_p7)
}
  0x10   :  { %s348_s22 = smov 128   ;;  %s349_s23 = smov 8  }
  0x11   :  { %23 = dma.hbm_to_vmem [thread:$0]  %s414_s1, 2048, %s18_s13, [#allocation7], %s348_s22, %s348_s22, %s349_s23  }
  0x12   :  { %343 = dma.done.wait [#allocation7], 2048  }
  0x13   :  { %344 = vsyncadd [#allocation7], 4294965248  ;;  %vm35_vm0 = vcmask 7168   ;;  %v350_v0 = vmov 0.0|0.0   ;;  %v351_v1 = vmov 0.0   ;;  %vm352_vm1 = vmmov 0  }
  0x14   :  { %256 = vmatprep.subr.bf16.mxu0 %v350_v0  ;;  %37 = vst.msk [vmem:[#allocation4] sm:$0xff] %vm35_vm0, %v351_v1  ;;  %38 = vst.msk [vmem:[#allocation5] sm:$0xff] %vm35_vm0, %v351_v1  ;;  %253 = vmatprep.mubr.msk.f32.mxu0 %vm352_vm1, %v351_v1  ;;  %v353_v2 = vmov 0   ;;  %v40_v3 = vld [vmem:[#allocation6] sm:$0xff]  ;;  %v41_v4 = vld [vmem:[#allocation6 + $0x8] sm:$0xff]  ;;  %v127_v30 = vlaneseq }
  0x15   :  { %292 = vset.pattern.permute.xlu1 %v353_v2  ;;  %291 = vset.pattern.permute.xlu0 %v353_v2  ;;  %v42_v5 = vld [vmem:[#allocation6 + $0x10] sm:$0xff]  ;;  %v257_v6 = vpack.c.bf16 %v41_v4, %v40_v3  ;;  %v43_v7 = vld [vmem:[#allocation6 + $0x18] sm:$0xff]  ;;  %v44_v9 = vld [vmem:[#allocation6 + $0x20] sm:$0xff]  ;;  %v354_v29 = vmov -1e+30  }
  0x16   :  { %v260_v8 = vpack.c.bf16 %v43_v7, %v42_v5  ;;  %v45_v10 = vld [vmem:[#allocation6 + $0x28] sm:$0xff]  ;;  %v46_v13 = vld [vmem:[#allocation6 + $0x30] sm:$0xff]  ;;  %v47_v14 = vld [vmem:[#allocation6 + $0x38] sm:$0xff]  ;;  %36 = vst.msk [vmem:[#allocation3] sm:$0xff] %vm35_vm0, %v354_v29  ;;  %v128_v31 = vand.u32 127, %v127_v30 }
  0x17   :  { %258 = vmatpush3.bf16.msra.mxu0 %v257_v6  ;;  %v131_v11 = vld [vmem:[%s415_s2] sm:$0xff]  ;;  %v263_v12 = vpack.c.bf16 %v45_v10, %v44_v9  ;;  %v266_v15 = vpack.c.bf16 %v47_v14, %v46_v13  ;;  %v48_v16 = vld [vmem:[#allocation6 + $0x40] sm:$0xff]  ;;  %v50_v19 = vld [vmem:[#allocation6 + $0x50] sm:$0xff] }
  0x18   :  { %259 = vmatprep.subr.bf16.mxu0 %v350_v0  ;;  %158 = vperm.xlu1 %292, %v131_v11   ;;  %v49_v17 = vld [vmem:[#allocation6 + $0x48] sm:$0xff]  ;;  %v51_v20 = vld [vmem:[#allocation6 + $0x58] sm:$0xff]  ;;  %v52_v22 = vld [vmem:[#allocation6 + $0x60] sm:$0xff]  ;;  %vm132_vm3 = vcmp.lt.s32.totalorder %v128_v31, 16 }
  0x19   :  { %v269_v18 = vpack.c.bf16 %v49_v17, %v48_v16  ;;  %v272_v21 = vpack.c.bf16 %v51_v20, %v50_v19  ;;  %v53_v23 = vld [vmem:[#allocation6 + $0x68] sm:$0xff]  ;;  %v54_v25 = vld [vmem:[#allocation6 + $0x70] sm:$0xff]  ;;  %v55_v26 = vld [vmem:[#allocation6 + $0x78] sm:$0xff] }
  0x1a   :  { %v275_v24 = vpack.c.bf16 %v53_v23, %v52_v22  ;;  %v278_v27 = vpack.c.bf16 %v55_v26, %v54_v25  ;;  %v39_v28 = vld [vmem:[%s413_s0] sm:$0xff]  ;;  %s355_s0 = smov [#allocation9]  }
  0x1b   :  { %261 = vmatpush3.bf16.msra.mxu0 %v260_v8  ;;  %v149_v47 = vld [vmem:[#allocation4] sm:$0xff]  ;;  %v156_v51 = vld [vmem:[#allocation5] sm:$0xff]  ;;  %s195_s28 = sshll.u32 %s355_s0, 4  ;;  %s196_s28 = int_to_ptr.vmem [resolvable:$true] %s195_s28 }
  0x1c   :  { %262 = vmatprep.subr.bf16.mxu0 %v350_v0  ;;  %s321_s30 = scalar_lea.vmem %s196_s28, 128  ;;  %p326_p9 = scmp.lt.s32.totalorder %s196_s28, %s196_s28 }
  0x1d   :  { %v134_v37 = vld [vmem:[#allocation3] sm:$0xff]  ;;  %p322_p8 = scmp.ne.s32.totalorder %s196_s28, %s321_s30  ;;  %p327_p10 = scmp.lt.s32.totalorder %s321_s30, %s321_s30 }
  0x1f   :  { %264 = vmatpush3.bf16.msra.mxu0 %v263_v12  ;;  %p328_p11 = por %p327_p10, %p326_p9 }
  0x20   :  { %265 = vmatprep.subr.bf16.mxu0 %v350_v0 }
  0x21   :  { %p329_p12 = pnand %p328_p11, %p322_p8 }
  0x23   :  { %267 = vmatpush3.bf16.msra.mxu0 %v266_v15 }
  0x24   :  { %268 = vmatprep.subr.bf16.mxu0 %v350_v0 }
  0x27   :  { %270 = vmatpush3.bf16.msra.mxu0 %v269_v18 }
  0x28   :  { %271 = vmatprep.subr.bf16.mxu0 %v350_v0 }
  0x2b   :  { %273 = vmatpush3.bf16.msra.mxu0 %v272_v21 }
  0x2c   :  { %274 = vmatprep.subr.bf16.mxu0 %v350_v0 }
  0x2f   :  { %276 = vmatpush3.bf16.msra.mxu0 %v275_v24 }
  0x30   :  { %277 = vmatprep.subr.bf16.mxu0 %v350_v0 }
  0x33   :  { %279 = vmatpush3.bf16.msra.mxu0 %v278_v27 }
  0x36   :  { %254 = vmatmul.mubr.f32.vlgmr.msra.gmra.mrb[0].mxu0 %v39_v28 }
  0x97   :  { %v159_v32 = vpop.permute.xlu1 %158 }
  0x98   :  { %vm160_vm2 = vcmp.eq.s32.totalorder %v128_v31, %v159_v32 }
 0x109   :  { %v122_v33 = vpop.f32.mrb[0].mxu0 }
 0x10a   :  { %v255_v34 = vpop.f32.mrb[1].mxu0  ;;  %v133_v35 = vsel %vm132_vm3, %v122_v33, -1e+30  ;;  %v161_v36 = vsel %vm160_vm2, %v122_v33, 0.0 }
 0x10b   :  { %135 = vmax.xlane.f32.xlu0 %v133_v35 }
 0x198   :  { %v136_v38 = vpop.xlane.xlu0 %135 }
 0x199   :  { %v137_v39 = vmax.f32 %v134_v37, %v136_v38 }
 0x19b   :  { %v138_v40 = vsub.f32 %v134_v37, %v137_v39  ;;  %166 = vst.msk [vmem:[#allocation3] sm:$0xff] %vm35_vm0, %v137_v39  ;;  %143 = vperm.xlu0 %291, %v137_v39  }
 0x19d   :  { %v139_v45 = vmul.f32 1.442695, %v138_v40 }
 0x1a2   :  { %v170_v57 = vld [vmem:[#allocation3] sm:$0xff] }
 0x21a   :  { %v144_v41 = vpop.permute.xlu0 %143 }
 0x21b   :  { %v146_v42 = vsub.f32 %v133_v35, %v144_v41 }
 0x21d   :  { %v147_v43 = vmul.f32 1.442695, %v146_v42 }
 0x21f   :  { %293 = vpow2.f32 %v147_v43 }
 0x220   :  { %295 = vpow2.f32 %v139_v45 }
 0x229   :  { %v294_v44 = vpop.eup %293 }
 0x22a   :  { %151 = vadd.xlane.f32.xlu1 %v294_v44  ;;  %v296_v46 = vpop.eup %295 }
 0x22b   :  { %v150_v48 = vmul.f32 %v296_v46, %v149_v47 }
 0x22e   :  { %162 = vadd.xlane.f32.xlu1 %v161_v36 }
 0x2b7   :  { %v152_v49 = vpop.xlane.xlu1 %151 }
 0x2b8   :  { %v153_v50 = vadd.f32 %v152_v49, %v150_v48 }
 0x2ba   :  { %155 = vst.msk [vmem:[#allocation4] sm:$0xff] %vm35_vm0, %v153_v50 }
 0x2bb   :  { %v163_v52 = vpop.xlane.xlu1 %162 }
 0x2bc   :  { %v164_v53 = vadd.f32 %v163_v52, %v156_v51 }
 0x2be   :  { %165 = vst.msk [vmem:[#allocation5] sm:$0xff] %vm35_vm0, %v164_v53 }
 0x2c1   :  { %v171_v54 = vld [vmem:[#allocation4] sm:$0xff] }
 0x2c2   :  { %297 = vlog2.f32 %v171_v54 }
 0x2c5   :  { %v175_v59 = vld [vmem:[#allocation5] sm:$0xff] }
 0x2cc   :  { %v298_v55 = vpop.eup %297 }
 0x2cd   :  { %v173_v56 = vmul.f32 0.6931472, %v298_v55 }
 0x2cf   :  { %v174_v58 = vadd.f32 %v173_v56, %v170_v57 }
 0x2d1   :  { %v176_v60 = vsub.f32 %v174_v58, %v175_v59 }
 0x2d3   :  { %v177_v61 = vsel %vm35_vm0, %v176_v60, 0.0 }
 0x2d4   :  { %178 = vadd.xlane.f32.xlu1 %v177_v61 }
 0x361   :  { %v179_v62 = vpop.xlane.xlu1 %178 }
 0x362   :  { %v180_v63 = vrot.slane %v179_v62, 4 }
 0x364   :  { %v181_v0 = vadd.f32 %v180_v63, %v179_v62 }
 0x366   :  { %v182_v1 = vrot.slane %v181_v0, 2 }
 0x368   :  { %v183_v2 = vadd.f32 %v182_v1, %v181_v0 }
 0x36a   :  { %v184_v3 = vrot.slane %v183_v2, 1 }
 0x36c   :  { %v185_v4 = vadd.f32 %v184_v3, %v183_v2 }
 0x36e   :  { %280 = vpush %v185_v4 }
 0x39f   :  { %s281_s29 = spop %280 }
 0x3a0   :  { %v187_v5 = vstv %s281_s29 }
 0x3a1   :  { %188 = vst [vmem:[#allocation9] sm:$0xff] %v187_v5 }
 0x3a2   :  { %332 = shalt.err (!%p329_p12)
}
 0x3a3   :  { %s333_s6 = scalar_lea.hbm %s416_s3, 128 }
 0x3a4   :  { %p334_p13 = scmp.ne.s32.totalorder %s416_s3, %s333_s6  ;;  %p337_p0 = scmp.lt.u32.totalorder %s333_s6, %s416_s3 }
 0x3a6   :  { %p339_p1 = pnand %p337_p0, %p334_p13 }
 0x3a8   :  { %342 = shalt.err (!%p339_p1)
}
 0x3a9   :  { %198 = dma.vmem_to_hbm [thread:$0]  %s196_s28, 128, %s416_s3, [#allocation8]  }
 0x3aa   :  { %345 = dma.done.wait [#allocation8], 128  }
 0x3ab   :  { %346 = vsyncadd [#allocation8], 4294967168 }
 0x3ac   :  { %202 = vsyncpa [#allocation7], 1 }
 0x3ad   :  { %203 = vsyncpa [#allocation8], 1 }

</bundles_post_ra>
